<compile_context>
chip_gen: v5e
topology: v5e:2x2
jax: 0.10.0
libtpu: 0.0.40
codegen_flags: <defaults>
</compile_context>

<pallas_src>
import jax
import jax.numpy as jnp
from jax.experimental import pallas as pl
from jax.experimental.pallas import tpu as pltpu

GRID_SIZE = 5        # efficient-KAN default
SPLINE_ORDER = 3     # efficient-KAN default
BN_EPS = 1e-5
N_COEFF = GRID_SIZE + SPLINE_ORDER          # 8 cubic-spline coefficients per input feature
KNOT_H = 2.0 / GRID_SIZE                    # uniform knot spacing, grid_range = [-1, 1]
INV_H = 1.0 / KNOT_H
LANE = 128


def _round_up(n, m):
    return (n + m - 1) // m * m


def _silu(x):
    # sigmoid via tanh: sigmoid(x) = 0.5*(tanh(x/2)+1) -> EUP slot instead of a VALU divide.
    return x * (0.5 * (jnp.tanh(0.5 * x) + 1.0))


def _cardinal_bspline(u):
    """Cubic cardinal B-spline M_3(u) on integer knots, evaluated elementwise.

    u holds the normalized coordinate t = (x - knot_0)/h minus the per-lane coefficient offset c,
    so M_3(u) == B_{c,3}(x) of the original (uniform) knot grid.  The per-level 1/k is folded into
    a pre-scaled coordinate; all remaining constants are compile-time Python floats.
    """
    m = [jnp.logical_and(u >= float(d), u < float(d + 1)).astype(jnp.float32)
         for d in range(SPLINE_ORDER + 1)]                       # 4 indicators
    for k in range(1, SPLINE_ORDER + 1):
        tk = u * (1.0 / k)                                        # one mul per level
        m = [(tk - d / k) * m[d] + ((d + k + 1) / k - tk) * m[d + 1]
             for d in range(len(m) - 1)]                          # 3 + 2 + 1 combines
    return m[0]


def _make_kernel(in_p, l1_p):
    """Fused (KANLinear+BN) -> Dropout(id) -> (KANLinear+BN); h never leaves VMEM/vregs."""

    def kernel(x_ref, r1_ref, b1_ref, w1_ref, s1_ref,
               r2_ref, b2_ref, w2_ref, s2_ref, out_ref, f1_ref, f2_ref):
        x = x_ref[...]                                            # (TB, in_p) f32

        # ---------------- layer 1: KANLinear + BatchNorm (scale folded into w1) ----------------
        f1_ref[:, :in_p] = _silu(x).astype(jnp.bfloat16)
        # structural replication (exact, f32): u[:, c*in_f+i] = (x_i+1)/h + order - c
        u1 = jnp.dot(x, r1_ref[...], preferred_element_type=jnp.float32) + b1_ref[...]
        f1_ref[:, in_p:] = _cardinal_bspline(u1).astype(jnp.bfloat16)
        h = jnp.dot(f1_ref[...], w1_ref[...],
                    preferred_element_type=jnp.float32) + s1_ref[...]
        # Dropout = identity in eval mode.

        # ---------------- layer 2: KANLinear + BatchNorm ----------------
        f2_ref[:, :l1_p] = _silu(h).astype(jnp.bfloat16)
        u2 = jnp.dot(h, r2_ref[...], preferred_element_type=jnp.float32) + b2_ref[...]
        f2_ref[:, l1_p:] = _cardinal_bspline(u2).astype(jnp.bfloat16)
        out = jnp.dot(f2_ref[...], w2_ref[...],
                      preferred_element_type=jnp.float32) + s2_ref[...]
        out_ref[...] = out.astype(out_ref.dtype)

    return kernel


# ------------------------ parameter construction / host-side layout ------------------------

def make_kan_params(key, in_f, out_f):
    """Deterministic synthetic KANLinear + eval-BatchNorm params (shapes match efficient-KAN)."""
    k1, k2, k3 = jax.random.split(key, 3)
    bound = 1.0 / jnp.sqrt(jnp.float32(in_f))
    base_w = jax.random.uniform(k1, (out_f, in_f), jnp.float32, -bound, bound)
    spline_w = jax.random.uniform(k2, (out_f, in_f, N_COEFF), jnp.float32, -0.1, 0.1)
    spline_scaler = jax.random.uniform(k3, (out_f, in_f), jnp.float32, -bound, bound)
    scaled_spline_w = spline_w * spline_scaler[..., None]              # (out, in, coeff)
    knots = jnp.arange(-SPLINE_ORDER, GRID_SIZE + SPLINE_ORDER + 1,
                       dtype=jnp.float32) * KNOT_H - 1.0               # (K,) for the reference
    # eval-mode BatchNorm1d with default init: gamma=1, beta=0, mean=0, var=1
    bn_scale = jnp.full((1, out_f), 1.0 / jnp.sqrt(1.0 + BN_EPS), jnp.float32)
    bn_shift = jnp.zeros((1, out_f), jnp.float32)
    return dict(base_w=base_w, scaled_spline_w=scaled_spline_w, knots=knots,
                bn_scale=bn_scale, bn_shift=bn_shift)


def _prepare_layer(p, in_p, out_p):
    """Host-side layout for one layer.

    Returns:
      w    : ((in_p + wb), out_p) bf16  combined [base | compact spline] weight, BN scale folded in
      shift: (1, out_p) f32             BN shift
      r    : (in_p, wb) f32             replication matrix, r[i, c*in_f+i] = 1/h
      bias : (1, wb) f32                1/h + order - c per lane (pad lanes pushed out of support)
    Padded rows/cols of w are exactly zero, so padding is inert.
    """
    out_f, in_f = p["base_w"].shape
    wb = _round_up(N_COEFF * in_f, LANE)

    base_w_t = jnp.pad(p["base_w"].T, ((0, in_p - in_f), (0, out_p - out_f)))
    # (out, in, coeff) -> (coeff, in, out); row c*in_f + i matches the compact basis lane layout
    # (same math as PyTorch's flattened F.linear: sum_{i,c} B_c(x_i) * w[o, i, c]).
    spline_w = jnp.transpose(p["scaled_spline_w"], (2, 1, 0)).reshape(N_COEFF * in_f, out_f)
    spline_w = jnp.pad(spline_w, ((0, wb - N_COEFF * in_f), (0, out_p - out_f)))
    w = jnp.concatenate([base_w_t, spline_w], axis=0)                  # (in_p + wb, out_p)

    scale = jnp.pad(p["bn_scale"], ((0, 0), (0, out_p - out_f)), constant_values=1.0)
    shift = jnp.pad(p["bn_shift"], ((0, 0), (0, out_p - out_f)))
    w = (w * scale).astype(jnp.bfloat16)

    cols = jnp.arange(N_COEFF * in_f)
    rows = cols % in_f
    offs = (cols // in_f).astype(jnp.float32)
    r = jnp.zeros((in_p, wb), jnp.float32).at[rows, cols].set(INV_H)
    bias = jnp.full((wb,), -1000.0, jnp.float32)       # pad lanes -> outside support -> basis = 0
    bias = bias.at[cols].set(INV_H + SPLINE_ORDER - offs)
    return w, shift, r, bias[None, :]


def encoder2_forward(x, p1, p2):
    B, in_f = x.shape
    l1 = p1["base_w"].shape[0]
    l2 = p2["base_w"].shape[0]
    in_p = _round_up(in_f, LANE)
    l1_p = _round_up(l1, LANE)
    l2_p = _round_up(l2, LANE)
    w1b = _round_up(N_COEFF * in_f, LANE)
    w2b = _round_up(N_COEFF * l1, LANE)

    w1, s1, r1, b1 = _prepare_layer(p1, in_p, l1_p)
    w2, s2, r2, b2 = _prepare_layer(p2, l1_p, l2_p)

    # Batch tiling: aim for >=2 grid steps when B permits (pipeline overlap + 2nd TC on v7x),
    # cap tb to bound the in-kernel feature temporaries under the 64 MiB v7x VMEM.
    tb = min(256, max(8, _round_up(_round_up(B, 8) // 2, 8)))
    b_pad = _round_up(B, tb)
    xp = jnp.pad(x, ((0, b_pad - B), (0, in_p - in_f)))

    # Grid-invariant operands: constant index_map + single buffer (no pointless double-buffering).
    def const_spec(shape):
        return pl.BlockSpec(shape, lambda i: (0, 0), pipeline_mode=pl.Buffered(1))

    consts = (r1, b1, w1, s1, r2, b2, w2, s2)
    const_bytes = sum(int(a.size) * a.dtype.itemsize for a in consts)
    io_bytes = 2 * (tb * in_p + tb * l2_p) * 4                       # double-buffered x / out tiles
    scratch_bytes = (tb * (in_p + w1b) + tb * (l1_p + w2b)) * 2      # bf16 feature slabs
    tmp_bytes = 8 * tb * max(in_p + w1b, l1_p + w2b) * 4             # in-kernel f32 temporaries
    vmem_bytes = int((const_bytes + io_bytes + scratch_bytes + tmp_bytes) * 3 // 2)
    vmem_bytes = min(max(vmem_bytes, 32 * 1024 * 1024), 100 * 1024 * 1024)

    out = pl.pallas_call(
        _make_kernel(in_p, l1_p),
        out_shape=jax.ShapeDtypeStruct((b_pad, l2_p), jnp.float32),
        grid=(b_pad // tb,),
        in_specs=[
            pl.BlockSpec((tb, in_p), lambda i: (i, 0)),
            const_spec((in_p, w1b)),
            const_spec((1, w1b)),
            const_spec((in_p + w1b, l1_p)),
            const_spec((1, l1_p)),
            const_spec((l1_p, w2b)),
            const_spec((1, w2b)),
            const_spec((l1_p + w2b, l2_p)),
            const_spec((1, l2_p)),
        ],
        out_specs=pl.BlockSpec((tb, l2_p), lambda i: (i, 0)),
        scratch_shapes=[
            pltpu.VMEM((tb, in_p + w1b), jnp.bfloat16),
            pltpu.VMEM((tb, l1_p + w2b), jnp.bfloat16),
        ],
        compiler_params=pltpu.CompilerParams(
            dimension_semantics=("parallel",),
            vmem_limit_bytes=vmem_bytes,
        ),
    )(xp, r1, b1, w1, s1, r2, b2, w2, s2)
    return out[:B, :l2]


# ------------------------ pure-JAX reference (PyTorch-order math, f32) ------------------------

def _b_splines_ref(x, knots):
    g = jnp.broadcast_to(knots[None, :], (x.shape[1], knots.shape[0]))   # (in, K)
    xe = x[:, :, None]
    bases = ((xe >= g[None, :, :-1]) & (xe < g[None, :, 1:])).astype(x.dtype)
    for k in range(1, SPLINE_ORDER + 1):
        bases = ((xe - g[None, :, :-(k + 1)])
                 / (g[None, :, k:-1] - g[None, :, :-(k + 1)]) * bases[:, :, :-1]
                 + (g[None, :, k + 1:] - xe)
                 / (g[None, :, k + 1:] - g[None, :, 1:-k]) * bases[:, :, 1:])
    return bases                                                         # (B, in, coeff)


def _kan_bn_ref(x, p):
    base = jax.nn.silu(x) @ p["base_w"].T
    bases = _b_splines_ref(x, p["knots"])
    B = x.shape[0]
    out_f = p["base_w"].shape[0]
    spline = bases.reshape(B, -1) @ p["scaled_spline_w"].reshape(out_f, -1).T
    return (base + spline) * p["bn_scale"] + p["bn_shift"]


if __name__ == "__main__":
    key = jax.random.PRNGKey(0)
    k_x, k_l1, k_l2 = jax.random.split(key, 3)

    B, IN, L1, L2 = 8, 16, 32, 16
    x = jax.random.normal(k_x, (B, IN), jnp.float32)

    p1 = make_kan_params(k_l1, IN, L1)
    p2 = make_kan_params(k_l2, L1, L2)

    out = jax.block_until_ready(encoder2_forward(x, p1, p2))

    ref = _kan_bn_ref(_kan_bn_ref(x, p1), p2)
    assert out.shape == (B, L2)
    max_err = float(jnp.max(jnp.abs(out - ref)))
    # bf16 matmul operands (f32 accumulation) -> loosened tolerance per review.
    assert max_err < 5e-2, f"max_err={max_err}"

    print("KERNEL_OK")
</pallas_src>

<mosaic_0001>
module attributes {stable_mosaic.version = 11 : i64} {
  func.func @kernel(%arg0: i32, %arg1: memref<8x128xf32, #tpu.memory_space<vmem>>, %arg2: memref<128x128xf32, #tpu.memory_space<vmem>>, %arg3: memref<1x128xf32, #tpu.memory_space<vmem>>, %arg4: memref<256x128xbf16, #tpu.memory_space<vmem>>, %arg5: memref<1x128xf32, #tpu.memory_space<vmem>>, %arg6: memref<128x256xf32, #tpu.memory_space<vmem>>, %arg7: memref<1x256xf32, #tpu.memory_space<vmem>>, %arg8: memref<384x128xbf16, #tpu.memory_space<vmem>>, %arg9: memref<1x128xf32, #tpu.memory_space<vmem>>, %arg10: memref<8x128xf32, #tpu.memory_space<vmem>>, %arg11: memref<8x256xbf16, #tpu.memory_space<vmem>>, %arg12: memref<8x384xbf16, #tpu.memory_space<vmem>>) attributes {dimension_semantics = [#tpu.dimension_semantics<parallel>], iteration_bounds = array<i64: 1>, scalar_prefetch = 0 : i64, scratch_operands = 2 : i64, tpu.core_type = #tpu.core_type<tc>, window_params = [{transform_indices = @transform_0, window_bounds = array<i64: 8, 128>}, {pipeline_mode = #tpu.pipeline_mode<synchronous>, transform_indices = @transform_1, window_bounds = array<i64: 128, 128>}, {pipeline_mode = #tpu.pipeline_mode<synchronous>, transform_indices = @transform_2, window_bounds = array<i64: 1, 128>}, {pipeline_mode = #tpu.pipeline_mode<synchronous>, transform_indices = @transform_3, window_bounds = array<i64: 256, 128>}, {pipeline_mode = #tpu.pipeline_mode<synchronous>, transform_indices = @transform_4, window_bounds = array<i64: 1, 128>}, {pipeline_mode = #tpu.pipeline_mode<synchronous>, transform_indices = @transform_5, window_bounds = array<i64: 128, 256>}, {pipeline_mode = #tpu.pipeline_mode<synchronous>, transform_indices = @transform_6, window_bounds = array<i64: 1, 256>}, {pipeline_mode = #tpu.pipeline_mode<synchronous>, transform_indices = @transform_7, window_bounds = array<i64: 384, 128>}, {pipeline_mode = #tpu.pipeline_mode<synchronous>, transform_indices = @transform_8, window_bounds = array<i64: 1, 128>}, {transform_indices = @transform_9, window_bounds = array<i64: 8, 128>}]} {
    %c0 = arith.constant 0 : index
    %c0_0 = arith.constant 0 : index
    %0 = vector.load %arg1[%c0, %c0_0] : memref<8x128xf32, #tpu.memory_space<vmem>>, vector<8x128xf32>
    %cst = arith.constant 5.000000e-01 : f32
    %1 = vector.broadcast %cst : f32 to vector<8x128xf32>
    %2 = arith.mulf %1, %0 : vector<8x128xf32>
    %3 = math.tanh %2 : vector<8x128xf32>
    %cst_1 = arith.constant 1.000000e+00 : f32
    %4 = vector.broadcast %cst_1 : f32 to vector<8x128xf32>
    %5 = arith.addf %3, %4 : vector<8x128xf32>
    %cst_2 = arith.constant 5.000000e-01 : f32
    %6 = vector.broadcast %cst_2 : f32 to vector<8x128xf32>
    %7 = arith.mulf %6, %5 : vector<8x128xf32>
    %8 = arith.mulf %0, %7 : vector<8x128xf32>
    %9 = arith.truncf %8 : vector<8x128xf32> to vector<8x128xbf16>
    %c0_3 = arith.constant 0 : index
    %c0_4 = arith.constant 0 : index
    %10 = vector.load %arg11[%c0_3, %c0_4] : memref<8x256xbf16, #tpu.memory_space<vmem>>, vector<8x128xbf16>
    tpu.vector_store %arg11[%c0_3, %c0_4], %9 {strides = array<i32>} : memref<8x256xbf16, #tpu.memory_space<vmem>>, vector<8x128xbf16>,
    %c0_5 = arith.constant 0 : index
    %c0_6 = arith.constant 0 : index
    %11 = vector.load %arg2[%c0_5, %c0_6] : memref<128x128xf32, #tpu.memory_space<vmem>>, vector<128x128xf32>
    %cst_7 = arith.constant dense<0.000000e+00> : vector<8x128xf32>
    %12 = tpu.matmul %0, %11, %cst_7 {dimension_numbers = #tpu.dot_dimension_numbers<[1], [0], [0], [1], [0, 0, 1, 1], [], []>} : vector<8x128xf32>, vector<128x128xf32>, vector<8x128xf32> -> vector<8x128xf32>
    %c0_8 = arith.constant 0 : index
    %c0_9 = arith.constant 0 : index
    %13 = vector.load %arg3[%c0_8, %c0_9] : memref<1x128xf32, #tpu.memory_space<vmem>>, vector<1x128xf32>
    %14 = vector.broadcast %13 : vector<1x128xf32> to vector<8x128xf32>
    %15 = arith.addf %12, %14 : vector<8x128xf32>
    %cst_10 = arith.constant 0.000000e+00 : f32
    %16 = vector.broadcast %cst_10 : f32 to vector<8x128xf32>
    %17 = arith.cmpf oge, %15, %16 : vector<8x128xf32>
    %cst_11 = arith.constant 1.000000e+00 : f32
    %18 = vector.broadcast %cst_11 : f32 to vector<8x128xf32>
    %19 = arith.cmpf olt, %15, %18 : vector<8x128xf32>
    %20 = arith.andi %17, %19 : vector<8x128xi1>
    %21 = arith.extui %20 : vector<8x128xi1> to vector<8x128xi32>
    %22 = arith.sitofp %21 : vector<8x128xi32> to vector<8x128xf32>
    %cst_12 = arith.constant 1.000000e+00 : f32
    %23 = vector.broadcast %cst_12 : f32 to vector<8x128xf32>
    %24 = arith.cmpf oge, %15, %23 : vector<8x128xf32>
    %cst_13 = arith.constant 2.000000e+00 : f32
    %25 = vector.broadcast %cst_13 : f32 to vector<8x128xf32>
    %26 = arith.cmpf olt, %15, %25 : vector<8x128xf32>
    %27 = arith.andi %24, %26 : vector<8x128xi1>
    %28 = arith.extui %27 : vector<8x128xi1> to vector<8x128xi32>
    %29 = arith.sitofp %28 : vector<8x128xi32> to vector<8x128xf32>
    %cst_14 = arith.constant 2.000000e+00 : f32
    %30 = vector.broadcast %cst_14 : f32 to vector<8x128xf32>
    %31 = arith.cmpf oge, %15, %30 : vector<8x128xf32>
    %cst_15 = arith.constant 3.000000e+00 : f32
    %32 = vector.broadcast %cst_15 : f32 to vector<8x128xf32>
    %33 = arith.cmpf olt, %15, %32 : vector<8x128xf32>
    %34 = arith.andi %31, %33 : vector<8x128xi1>
    %35 = arith.extui %34 : vector<8x128xi1> to vector<8x128xi32>
    %36 = arith.sitofp %35 : vector<8x128xi32> to vector<8x128xf32>
    %cst_16 = arith.constant 3.000000e+00 : f32
    %37 = vector.broadcast %cst_16 : f32 to vector<8x128xf32>
    %38 = arith.cmpf oge, %15, %37 : vector<8x128xf32>
    %cst_17 = arith.constant 4.000000e+00 : f32
    %39 = vector.broadcast %cst_17 : f32 to vector<8x128xf32>
    %40 = arith.cmpf olt, %15, %39 : vector<8x128xf32>
    %41 = arith.andi %38, %40 : vector<8x128xi1>
    %42 = arith.extui %41 : vector<8x128xi1> to vector<8x128xi32>
    %43 = arith.sitofp %42 : vector<8x128xi32> to vector<8x128xf32>
    %cst_18 = arith.constant 1.000000e+00 : f32
    %44 = vector.broadcast %cst_18 : f32 to vector<8x128xf32>
    %45 = arith.mulf %15, %44 : vector<8x128xf32>
    %cst_19 = arith.constant 0.000000e+00 : f32
    %46 = vector.broadcast %cst_19 : f32 to vector<8x128xf32>
    %47 = arith.subf %45, %46 : vector<8x128xf32>
    %48 = arith.mulf %47, %22 : vector<8x128xf32>
    %cst_20 = arith.constant 2.000000e+00 : f32
    %49 = vector.broadcast %cst_20 : f32 to vector<8x128xf32>
    %50 = arith.subf %49, %45 : vector<8x128xf32>
    %51 = arith.mulf %50, %29 : vector<8x128xf32>
    %52 = arith.addf %48, %51 : vector<8x128xf32>
    %cst_21 = arith.constant 1.000000e+00 : f32
    %53 = vector.broadcast %cst_21 : f32 to vector<8x128xf32>
    %54 = arith.subf %45, %53 : vector<8x128xf32>
    %55 = arith.mulf %54, %29 : vector<8x128xf32>
    %cst_22 = arith.constant 3.000000e+00 : f32
    %56 = vector.broadcast %cst_22 : f32 to vector<8x128xf32>
    %57 = arith.subf %56, %45 : vector<8x128xf32>
    %58 = arith.mulf %57, %36 : vector<8x128xf32>
    %59 = arith.addf %55, %58 : vector<8x128xf32>
    %cst_23 = arith.constant 2.000000e+00 : f32
    %60 = vector.broadcast %cst_23 : f32 to vector<8x128xf32>
    %61 = arith.subf %45, %60 : vector<8x128xf32>
    %62 = arith.mulf %61, %36 : vector<8x128xf32>
    %cst_24 = arith.constant 4.000000e+00 : f32
    %63 = vector.broadcast %cst_24 : f32 to vector<8x128xf32>
    %64 = arith.subf %63, %45 : vector<8x128xf32>
    %65 = arith.mulf %64, %43 : vector<8x128xf32>
    %66 = arith.addf %62, %65 : vector<8x128xf32>
    %cst_25 = arith.constant 5.000000e-01 : f32
    %67 = vector.broadcast %cst_25 : f32 to vector<8x128xf32>
    %68 = arith.mulf %15, %67 : vector<8x128xf32>
    %cst_26 = arith.constant 0.000000e+00 : f32
    %69 = vector.broadcast %cst_26 : f32 to vector<8x128xf32>
    %70 = arith.subf %68, %69 : vector<8x128xf32>
    %71 = arith.mulf %70, %52 : vector<8x128xf32>
    %cst_27 = arith.constant 1.500000e+00 : f32
    %72 = vector.broadcast %cst_27 : f32 to vector<8x128xf32>
    %73 = arith.subf %72, %68 : vector<8x128xf32>
    %74 = arith.mulf %73, %59 : vector<8x128xf32>
    %75 = arith.addf %71, %74 : vector<8x128xf32>
    %cst_28 = arith.constant 5.000000e-01 : f32
    %76 = vector.broadcast %cst_28 : f32 to vector<8x128xf32>
    %77 = arith.subf %68, %76 : vector<8x128xf32>
    %78 = arith.mulf %77, %59 : vector<8x128xf32>
    %cst_29 = arith.constant 2.000000e+00 : f32
    %79 = vector.broadcast %cst_29 : f32 to vector<8x128xf32>
    %80 = arith.subf %79, %68 : vector<8x128xf32>
    %81 = arith.mulf %80, %66 : vector<8x128xf32>
    %82 = arith.addf %78, %81 : vector<8x128xf32>
    %cst_30 = arith.constant 0.333333343 : f32
    %83 = vector.broadcast %cst_30 : f32 to vector<8x128xf32>
    %84 = arith.mulf %15, %83 : vector<8x128xf32>
    %cst_31 = arith.constant 0.000000e+00 : f32
    %85 = vector.broadcast %cst_31 : f32 to vector<8x128xf32>
    %86 = arith.subf %84, %85 : vector<8x128xf32>
    %87 = arith.mulf %86, %75 : vector<8x128xf32>
    %cst_32 = arith.constant 1.33333337 : f32
    %88 = vector.broadcast %cst_32 : f32 to vector<8x128xf32>
    %89 = arith.subf %88, %84 : vector<8x128xf32>
    %90 = arith.mulf %89, %82 : vector<8x128xf32>
    %91 = arith.addf %87, %90 : vector<8x128xf32>
    %92 = arith.truncf %91 : vector<8x128xf32> to vector<8x128xbf16>
    %c0_33 = arith.constant 0 : index
    %c128 = arith.constant 128 : index
    %93 = vector.load %arg11[%c0_33, %c128] : memref<8x256xbf16, #tpu.memory_space<vmem>>, vector<8x128xbf16>
    tpu.vector_store %arg11[%c0_33, %c128], %92 {strides = array<i32>} : memref<8x256xbf16, #tpu.memory_space<vmem>>, vector<8x128xbf16>,
    %c0_34 = arith.constant 0 : index
    %c0_35 = arith.constant 0 : index
    %94 = vector.load %arg11[%c0_34, %c0_35] : memref<8x256xbf16, #tpu.memory_space<vmem>>, vector<8x256xbf16>
    %c0_36 = arith.constant 0 : index
    %c0_37 = arith.constant 0 : index
    %95 = vector.load %arg4[%c0_36, %c0_37] : memref<256x128xbf16, #tpu.memory_space<vmem>>, vector<256x128xbf16>
    %cst_38 = arith.constant dense<0.000000e+00> : vector<8x128xf32>
    %96 = tpu.matmul %94, %95, %cst_38 {dimension_numbers = #tpu.dot_dimension_numbers<[1], [0], [0], [1], [0, 0, 1, 1], [], []>} : vector<8x256xbf16>, vector<256x128xbf16>, vector<8x128xf32> -> vector<8x128xf32>
    %c0_39 = arith.constant 0 : index
    %c0_40 = arith.constant 0 : index
    %97 = vector.load %arg5[%c0_39, %c0_40] : memref<1x128xf32, #tpu.memory_space<vmem>>, vector<1x128xf32>
    %98 = vector.broadcast %97 : vector<1x128xf32> to vector<8x128xf32>
    %99 = arith.addf %96, %98 : vector<8x128xf32>
    %cst_41 = arith.constant 5.000000e-01 : f32
    %100 = vector.broadcast %cst_41 : f32 to vector<8x128xf32>
    %101 = arith.mulf %100, %99 : vector<8x128xf32>
    %102 = math.tanh %101 : vector<8x128xf32>
    %cst_42 = arith.constant 1.000000e+00 : f32
    %103 = vector.broadcast %cst_42 : f32 to vector<8x128xf32>
    %104 = arith.addf %102, %103 : vector<8x128xf32>
    %cst_43 = arith.constant 5.000000e-01 : f32
    %105 = vector.broadcast %cst_43 : f32 to vector<8x128xf32>
    %106 = arith.mulf %105, %104 : vector<8x128xf32>
    %107 = arith.mulf %99, %106 : vector<8x128xf32>
    %108 = arith.truncf %107 : vector<8x128xf32> to vector<8x128xbf16>
    %c0_44 = arith.constant 0 : index
    %c0_45 = arith.constant 0 : index
    %109 = vector.load %arg12[%c0_44, %c0_45] : memref<8x384xbf16, #tpu.memory_space<vmem>>, vector<8x128xbf16>
    tpu.vector_store %arg12[%c0_44, %c0_45], %108 {strides = array<i32>} : memref<8x384xbf16, #tpu.memory_space<vmem>>, vector<8x128xbf16>,
    %c0_46 = arith.constant 0 : index
    %c0_47 = arith.constant 0 : index
    %110 = vector.load %arg6[%c0_46, %c0_47] : memref<128x256xf32, #tpu.memory_space<vmem>>, vector<128x256xf32>
    %cst_48 = arith.constant dense<0.000000e+00> : vector<8x256xf32>
    %111 = tpu.matmul %99, %110, %cst_48 {dimension_numbers = #tpu.dot_dimension_numbers<[1], [0], [0], [1], [0, 0, 1, 1], [], []>} : vector<8x128xf32>, vector<128x256xf32>, vector<8x256xf32> -> vector<8x256xf32>
    %c0_49 = arith.constant 0 : index
    %c0_50 = arith.constant 0 : index
    %112 = vector.load %arg7[%c0_49, %c0_50] : memref<1x256xf32, #tpu.memory_space<vmem>>, vector<1x256xf32>
    %113 = vector.broadcast %112 : vector<1x256xf32> to vector<8x256xf32>
    %114 = arith.addf %111, %113 : vector<8x256xf32>
    %cst_51 = arith.constant 0.000000e+00 : f32
    %115 = vector.broadcast %cst_51 : f32 to vector<8x256xf32>
    %116 = arith.cmpf oge, %114, %115 : vector<8x256xf32>
    %cst_52 = arith.constant 1.000000e+00 : f32
    %117 = vector.broadcast %cst_52 : f32 to vector<8x256xf32>
    %118 = arith.cmpf olt, %114, %117 : vector<8x256xf32>
    %119 = arith.andi %116, %118 : vector<8x256xi1>
    %120 = arith.extui %119 : vector<8x256xi1> to vector<8x256xi32>
    %121 = arith.sitofp %120 : vector<8x256xi32> to vector<8x256xf32>
    %cst_53 = arith.constant 1.000000e+00 : f32
    %122 = vector.broadcast %cst_53 : f32 to vector<8x256xf32>
    %123 = arith.cmpf oge, %114, %122 : vector<8x256xf32>
    %cst_54 = arith.constant 2.000000e+00 : f32
    %124 = vector.broadcast %cst_54 : f32 to vector<8x256xf32>
    %125 = arith.cmpf olt, %114, %124 : vector<8x256xf32>
    %126 = arith.andi %123, %125 : vector<8x256xi1>
    %127 = arith.extui %126 : vector<8x256xi1> to vector<8x256xi32>
    %128 = arith.sitofp %127 : vector<8x256xi32> to vector<8x256xf32>
    %cst_55 = arith.constant 2.000000e+00 : f32
    %129 = vector.broadcast %cst_55 : f32 to vector<8x256xf32>
    %130 = arith.cmpf oge, %114, %129 : vector<8x256xf32>
    %cst_56 = arith.constant 3.000000e+00 : f32
    %131 = vector.broadcast %cst_56 : f32 to vector<8x256xf32>
    %132 = arith.cmpf olt, %114, %131 : vector<8x256xf32>
    %133 = arith.andi %130, %132 : vector<8x256xi1>
    %134 = arith.extui %133 : vector<8x256xi1> to vector<8x256xi32>
    %135 = arith.sitofp %134 : vector<8x256xi32> to vector<8x256xf32>
    %cst_57 = arith.constant 3.000000e+00 : f32
    %136 = vector.broadcast %cst_57 : f32 to vector<8x256xf32>
    %137 = arith.cmpf oge, %114, %136 : vector<8x256xf32>
    %cst_58 = arith.constant 4.000000e+00 : f32
    %138 = vector.broadcast %cst_58 : f32 to vector<8x256xf32>
    %139 = arith.cmpf olt, %114, %138 : vector<8x256xf32>
    %140 = arith.andi %137, %139 : vector<8x256xi1>
    %141 = arith.extui %140 : vector<8x256xi1> to vector<8x256xi32>
    %142 = arith.sitofp %141 : vector<8x256xi32> to vector<8x256xf32>
    %cst_59 = arith.constant 1.000000e+00 : f32
    %143 = vector.broadcast %cst_59 : f32 to vector<8x256xf32>
    %144 = arith.mulf %114, %143 : vector<8x256xf32>
    %cst_60 = arith.constant 0.000000e+00 : f32
    %145 = vector.broadcast %cst_60 : f32 to vector<8x256xf32>
    %146 = arith.subf %144, %145 : vector<8x256xf32>
    %147 = arith.mulf %146, %121 : vector<8x256xf32>
    %cst_61 = arith.constant 2.000000e+00 : f32
    %148 = vector.broadcast %cst_61 : f32 to vector<8x256xf32>
    %149 = arith.subf %148, %144 : vector<8x256xf32>
    %150 = arith.mulf %149, %128 : vector<8x256xf32>
    %151 = arith.addf %147, %150 : vector<8x256xf32>
    %cst_62 = arith.constant 1.000000e+00 : f32
    %152 = vector.broadcast %cst_62 : f32 to vector<8x256xf32>
    %153 = arith.subf %144, %152 : vector<8x256xf32>
    %154 = arith.mulf %153, %128 : vector<8x256xf32>
    %cst_63 = arith.constant 3.000000e+00 : f32
    %155 = vector.broadcast %cst_63 : f32 to vector<8x256xf32>
    %156 = arith.subf %155, %144 : vector<8x256xf32>
    %157 = arith.mulf %156, %135 : vector<8x256xf32>
    %158 = arith.addf %154, %157 : vector<8x256xf32>
    %cst_64 = arith.constant 2.000000e+00 : f32
    %159 = vector.broadcast %cst_64 : f32 to vector<8x256xf32>
    %160 = arith.subf %144, %159 : vector<8x256xf32>
    %161 = arith.mulf %160, %135 : vector<8x256xf32>
    %cst_65 = arith.constant 4.000000e+00 : f32
    %162 = vector.broadcast %cst_65 : f32 to vector<8x256xf32>
    %163 = arith.subf %162, %144 : vector<8x256xf32>
    %164 = arith.mulf %163, %142 : vector<8x256xf32>
    %165 = arith.addf %161, %164 : vector<8x256xf32>
    %cst_66 = arith.constant 5.000000e-01 : f32
    %166 = vector.broadcast %cst_66 : f32 to vector<8x256xf32>
    %167 = arith.mulf %114, %166 : vector<8x256xf32>
    %cst_67 = arith.constant 0.000000e+00 : f32
    %168 = vector.broadcast %cst_67 : f32 to vector<8x256xf32>
    %169 = arith.subf %167, %168 : vector<8x256xf32>
    %170 = arith.mulf %169, %151 : vector<8x256xf32>
    %cst_68 = arith.constant 1.500000e+00 : f32
    %171 = vector.broadcast %cst_68 : f32 to vector<8x256xf32>
    %172 = arith.subf %171, %167 : vector<8x256xf32>
    %173 = arith.mulf %172, %158 : vector<8x256xf32>
    %174 = arith.addf %170, %173 : vector<8x256xf32>
    %cst_69 = arith.constant 5.000000e-01 : f32
    %175 = vector.broadcast %cst_69 : f32 to vector<8x256xf32>
    %176 = arith.subf %167, %175 : vector<8x256xf32>
    %177 = arith.mulf %176, %158 : vector<8x256xf32>
    %cst_70 = arith.constant 2.000000e+00 : f32
    %178 = vector.broadcast %cst_70 : f32 to vector<8x256xf32>
    %179 = arith.subf %178, %167 : vector<8x256xf32>
    %180 = arith.mulf %179, %165 : vector<8x256xf32>
    %181 = arith.addf %177, %180 : vector<8x256xf32>
    %cst_71 = arith.constant 0.333333343 : f32
    %182 = vector.broadcast %cst_71 : f32 to vector<8x256xf32>
    %183 = arith.mulf %114, %182 : vector<8x256xf32>
    %cst_72 = arith.constant 0.000000e+00 : f32
    %184 = vector.broadcast %cst_72 : f32 to vector<8x256xf32>
    %185 = arith.subf %183, %184 : vector<8x256xf32>
    %186 = arith.mulf %185, %174 : vector<8x256xf32>
    %cst_73 = arith.constant 1.33333337 : f32
    %187 = vector.broadcast %cst_73 : f32 to vector<8x256xf32>
    %188 = arith.subf %187, %183 : vector<8x256xf32>
    %189 = arith.mulf %188, %181 : vector<8x256xf32>
    %190 = arith.addf %186, %189 : vector<8x256xf32>
    %191 = arith.truncf %190 : vector<8x256xf32> to vector<8x256xbf16>
    %c0_74 = arith.constant 0 : index
    %c128_75 = arith.constant 128 : index
    %192 = vector.load %arg12[%c0_74, %c128_75] : memref<8x384xbf16, #tpu.memory_space<vmem>>, vector<8x256xbf16>
    tpu.vector_store %arg12[%c0_74, %c128_75], %191 {strides = array<i32>} : memref<8x384xbf16, #tpu.memory_space<vmem>>, vector<8x256xbf16>,
    %c0_76 = arith.constant 0 : index
    %c0_77 = arith.constant 0 : index
    %193 = vector.load %arg12[%c0_76, %c0_77] : memref<8x384xbf16, #tpu.memory_space<vmem>>, vector<8x384xbf16>
    %c0_78 = arith.constant 0 : index
    %c0_79 = arith.constant 0 : index
    %194 = vector.load %arg8[%c0_78, %c0_79] : memref<384x128xbf16, #tpu.memory_space<vmem>>, vector<384x128xbf16>
    %cst_80 = arith.constant dense<0.000000e+00> : vector<8x128xf32>
    %195 = tpu.matmul %193, %194, %cst_80 {dimension_numbers = #tpu.dot_dimension_numbers<[1], [0], [0], [1], [0, 0, 1, 1], [], []>} : vector<8x384xbf16>, vector<384x128xbf16>, vector<8x128xf32> -> vector<8x128xf32>
    %c0_81 = arith.constant 0 : index
    %c0_82 = arith.constant 0 : index
    %196 = vector.load %arg9[%c0_81, %c0_82] : memref<1x128xf32, #tpu.memory_space<vmem>>, vector<1x128xf32>
    %197 = vector.broadcast %196 : vector<1x128xf32> to vector<8x128xf32>
    %198 = arith.addf %195, %197 : vector<8x128xf32>
    %c0_83 = arith.constant 0 : index
    %c0_84 = arith.constant 0 : index
    %199 = vector.load %arg10[%c0_83, %c0_84] : memref<8x128xf32, #tpu.memory_space<vmem>>, vector<8x128xf32>
    tpu.vector_store %arg10[%c0_83, %c0_84], %198 {strides = array<i32>} : memref<8x128xf32, #tpu.memory_space<vmem>>, vector<8x128xf32>,
    return
  }
  func.func @transform_0(%arg0: i32) -> (i32, i32) {
    %c0_i32 = arith.constant 0 : i32
    %c0_i32_0 = arith.constant 0 : i32
    return %arg0, %c0_i32 : i32, i32
  }
  func.func @transform_1(%arg0: i32) -> (i32, i32) {
    %c0_i32 = arith.constant 0 : i32
    %c0_i32_0 = arith.constant 0 : i32
    %c0_i32_1 = arith.constant 0 : i32
    return %c0_i32, %c0_i32_0 : i32, i32
  }
  func.func @transform_2(%arg0: i32) -> (i32, i32) {
    %c0_i32 = arith.constant 0 : i32
    %c0_i32_0 = arith.constant 0 : i32
    %c0_i32_1 = arith.constant 0 : i32
    return %c0_i32, %c0_i32_0 : i32, i32
  }
  func.func @transform_3(%arg0: i32) -> (i32, i32) {
    %c0_i32 = arith.constant 0 : i32
    %c0_i32_0 = arith.constant 0 : i32
    %c0_i32_1 = arith.constant 0 : i32
    return %c0_i32, %c0_i32_0 : i32, i32
  }
  func.func @transform_4(%arg0: i32) -> (i32, i32) {
    %c0_i32 = arith.constant 0 : i32
    %c0_i32_0 = arith.constant 0 : i32
    %c0_i32_1 = arith.constant 0 : i32
    return %c0_i32, %c0_i32_0 : i32, i32
  }
  func.func @transform_5(%arg0: i32) -> (i32, i32) {
    %c0_i32 = arith.constant 0 : i32
    %c0_i32_0 = arith.constant 0 : i32
    %c0_i32_1 = arith.constant 0 : i32
    return %c0_i32, %c0_i32_0 : i32, i32
  }
  func.func @transform_6(%arg0: i32) -> (i32, i32) {
    %c0_i32 = arith.constant 0 : i32
    %c0_i32_0 = arith.constant 0 : i32
    %c0_i32_1 = arith.constant 0 : i32
    return %c0_i32, %c0_i32_0 : i32, i32
  }
  func.func @transform_7(%arg0: i32) -> (i32, i32) {
    %c0_i32 = arith.constant 0 : i32
    %c0_i32_0 = arith.constant 0 : i32
    %c0_i32_1 = arith.constant 0 : i32
    return %c0_i32, %c0_i32_0 : i32, i32
  }
  func.func @transform_8(%arg0: i32) -> (i32, i32) {
    %c0_i32 = arith.constant 0 : i32
    %c0_i32_0 = arith.constant 0 : i32
    %c0_i32_1 = arith.constant 0 : i32
    return %c0_i32, %c0_i32_0 : i32, i32
  }
  func.func @transform_9(%arg0: i32) -> (i32, i32) {
    %c0_i32 = arith.constant 0 : i32
    %c0_i32_0 = arith.constant 0 : i32
    return %arg0, %c0_i32 : i32, i32
  }
}

</mosaic_0001>

<bundles_post_ra>
// kernel: tpu_custom_call.1
= control target key start
LH: loop header
LB: loop body
LE: loop exit
PB: predicated region body
PF: predicated region fallthrough
CT: control target
= control target key end

     0   :  { %14 = vsyncpa [#allocation5], 0  ;;  %s1395_s0 = inlined_call_operand.hbm [shape: f32[8,128], index: 0, kind: input, shape index: {}]   ;;  %s1396_s1 = inlined_call_operand.hbm [shape: f32[128,128], index: 1, kind: input, shape index: {}]   ;;  %s1397_s2 = inlined_call_operand.vmem [shape: f32[1,128], index: 2, kind: input, shape index: {}]   ;;  %s1398_s3 = inlined_call_operand.hbm [shape: bf16[256,128], index: 3, kind: input, shape index: {}]   ;;  %s1399_s4 = inlined_call_operand.hbm [shape: f32[1,128], index: 4, kind: input, shape index: {}]   ;;  %s1400_s5 = inlined_call_operand.hbm [shape: f32[128,256], index: 5, kind: input, shape index: {}]   ;;  %s1401_s6 = inlined_call_operand.vmem [shape: f32[1,256], index: 6, kind: input, shape index: {}]   ;;  %s1402_s7 = inlined_call_operand.hbm [shape: bf16[384,128], index: 7, kind: input, shape index: {}]   ;;  %s1403_s8 = inlined_call_operand.vmem [shape: f32[1,128], index: 8, kind: input, shape index: {}]   ;;  %s1404_s9 = inlined_call_operand.hbm [shape: f32[8,128], index: 9, kind: output, shape index: {}]  }
   0x1   :  { %15 = vsyncpa [#allocation8], 0 }
   0x2   :  { %16 = vsyncpa [#allocation11], 0 }
   0x3   :  { %17 = vsyncpa [#allocation14], 0  ;;  %s34_s11 = sshll.u32 %s1396_s1, 4  ;;  %s35_s11 = int_to_ptr.hbm [resolvable:$true] %s34_s11 }
   0x4   :  { %18 = vsyncpa [#allocation6], 0  ;;  %s1262_s12 = smov [#allocation7]   ;;  %s63_s16 = sshll.u32 %s1399_s4, 4  ;;  %s64_s16 = int_to_ptr.hbm [resolvable:$true] %s63_s16 }
   0x5   :  { %s36_s13 = sshll.u32 %s1262_s12, 4  ;;  %s1263_s17 = smov 128   ;;  %s37_s13 = int_to_ptr.vmem [resolvable:$true] %s36_s13 }
   0x6   :  { %s1264_s18 = smov 8   ;;  %s1265_s19 = smov [#allocation10]  }
   0x7   :  { %42 = dma.hbm_to_vmem [thread:$0]  %s35_s11, 2048, %s37_s13, [#allocation8], %s1263_s17, %s1263_s17, %s1264_s18  }
   0x8   :  { %s65_s20 = sshll.u32 %s1265_s19, 4  ;;  %s24_s23 = sshll.u32 %s1395_s0, 4  ;;  %s66_s20 = int_to_ptr.vmem [resolvable:$true] %s65_s20  ;;  %s25_s23 = int_to_ptr.hbm [resolvable:$true] %s24_s23 }
   0x9   :  { %68 = dma.hbm_to_vmem [thread:$0]  %s64_s16, 16, %s66_s20, [#allocation11]  }
   0xa   :  { %s49_s25 = sshll.u32 %s1398_s3, 4  ;;  %s1266_s26 = smov [#allocation4]   ;;  %s50_s25 = int_to_ptr.hbm [resolvable:$true] %s49_s25 }
   0xb   :  { %s26_s27 = sshll.u32 %s1266_s26, 4  ;;  %s1267_s4 = smov [#allocation9]   ;;  %s27_s27 = int_to_ptr.vmem [resolvable:$true] %s26_s27 }
   0xc   :  { %29 = dma.hbm_to_vmem [thread:$0]  %s25_s23, 128, %s27_s27, [#allocation5]  }
   0xd   :  { %s51_s28 = sshll.u32 %s1267_s4, 4  ;;  %s1268_s29 = smov 64   ;;  %s52_s28 = int_to_ptr.vmem [resolvable:$true] %s51_s28 }
   0xe   :  { %s1269_s30 = smov 4   ;;  %s73_s11 = sshll.u32 %s1400_s5, 4  ;;  %s74_s11 = int_to_ptr.hbm [resolvable:$true] %s73_s11 }
   0xf   :  { %57 = dma.hbm_to_vmem [thread:$0]  %s50_s25, 2048, %s52_s28, [#allocation8], %s1268_s29, %s1268_s29, %s1269_s30  }
  0x10   :  { %s1270_s12 = smov [#allocation12]   ;;  %s88_s15 = sshll.u32 %s1402_s7, 4  ;;  %s89_s15 = int_to_ptr.hbm [resolvable:$true] %s88_s15 }
  0x11   :  { %s75_s13 = sshll.u32 %s1270_s12, 4  ;;  %s1271_s16 = smov 256   ;;  %s76_s13 = int_to_ptr.vmem [resolvable:$true] %s75_s13 }
  0x12   :  { %s1272_s17 = smov 16   ;;  %s1273_s18 = smov [#allocation13]  }
  0x13   :  { %81 = dma.hbm_to_vmem [thread:$0]  %s74_s11, 4096, %s76_s13, [#allocation11], %s1271_s16, %s1271_s16, %s1272_s17  }
  0x14   :  { %s90_s19 = sshll.u32 %s1273_s18, 4  ;;  %s91_s19 = int_to_ptr.vmem [resolvable:$true] %s90_s19 }
  0x15   :  { %96 = dma.hbm_to_vmem [thread:$0]  %s89_s15, 3072, %s91_s19, [#allocation14], %s1268_s29, %s1268_s29, %s1269_s30  }
  0x16   :  { %1252 = dma.done.wait [#allocation5], 128  }
  0x17   :  { %1253 = vsyncadd [#allocation5], 4294967168 }
  0x18   :  { %1254 = dma.done.wait [#allocation8], 4096  }
  0x19   :  { %1255 = vsyncadd [#allocation8], 4294963200 }
  0x1a   :  { %1256 = dma.done.wait [#allocation11], 4112  }
  0x1b   :  { %1257 = vsyncadd [#allocation11], 4294963184 }
  0x1c   :  { %1258 = dma.done.wait [#allocation14], 3072  }
  0x1d   :  { %1259 = vsyncadd [#allocation14], 4294964224  ;;  %v146_v0 = vld [vmem:[#allocation7 + $0x78] sm:$0xff]  ;;  %v145_v1 = vld [vmem:[#allocation7 + $0x70] sm:$0xff]  ;;  %v1274_v46 = vmov 0.0   ;;  %s1275_s22 = smov [#allocation15]  }
  0x1e   :  { %151 = vmatpush.msra.mxu0 %v146_v0  ;;  %v144_v2 = vld [vmem:[#allocation7 + $0x68] sm:$0xff]  ;;  %v143_v3 = vld [vmem:[#allocation7 + $0x60] sm:$0xff]  ;;  %v123_v4 = vld [vmem:[#allocation4] sm:$0xff]  ;;  %s827_s23 = sshll.u32 %s1275_s22, 4  ;;  %s829_s25 = sshll.u32 %s1404_s9, 4  ;;  %s828_s23 = int_to_ptr.vmem [resolvable:$true] %s827_s23  ;;  %s830_s25 = int_to_ptr.hbm [resolvable:$true] %s829_s25 }
  0x1f   :  { %v142_v5 = vld [vmem:[#allocation7 + $0x58] sm:$0xff]  ;;  %v124_v6 = vmul.f32 0.5, %v123_v4  ;;  %v141_v7 = vld [vmem:[#allocation7 + $0x50] sm:$0xff]  ;;  %v140_v8 = vld [vmem:[#allocation7 + $0x48] sm:$0xff] }
  0x20   :  { %152 = vmatpush.msra.mxu0 %v145_v1  ;;  %v139_v9 = vld [vmem:[#allocation7 + $0x40] sm:$0xff]  ;;  %v138_v11 = vld [vmem:[#allocation7 + $0x38] sm:$0xff]  ;;  %v137_v13 = vld [vmem:[#allocation7 + $0x30] sm:$0xff] }
  0x21   :  { %1080 = vtanh.f32 %v124_v6  ;;  %v136_v15 = vld [vmem:[#allocation7 + $0x28] sm:$0xff]  ;;  %v135_v17 = vld [vmem:[#allocation7 + $0x20] sm:$0xff]  ;;  %v134_v19 = vld [vmem:[#allocation7 + $0x18] sm:$0xff] }
  0x22   :  { %153 = vmatpush.msra.mxu0 %v144_v2  ;;  %v133_v20 = vld [vmem:[#allocation7 + $0x10] sm:$0xff]  ;;  %v132_v21 = vld [vmem:[#allocation7 + $0x8] sm:$0xff]  ;;  %v131_v22 = vld [vmem:[#allocation7] sm:$0xff] }
  0x23   :  { %v1030_v23 = vld [vmem:[#allocation9 + $0x38] sm:$0xff]  ;;  %v1029_v25 = vld [vmem:[#allocation9 + $0x30] sm:$0xff]  ;;  %v1028_v27 = vld [vmem:[#allocation9 + $0x28] sm:$0xff] }
  0x24   :  { %154 = vmatpush.msra.mxu0 %v143_v3  ;;  %v1038_v24 = vld [vmem:[#allocation9 + $0x78] sm:$0xff]  ;;  %362 = vmatpush.bf16.msra.mxu1 %v1030_v23  ;;  %v1037_v26 = vld [vmem:[#allocation9 + $0x70] sm:$0xff]  ;;  %v1036_v28 = vld [vmem:[#allocation9 + $0x68] sm:$0xff] }
  0x25   :  { %375 = vmatpush.bf16.msra.mxu2 %v1038_v24  ;;  %v1027_v29 = vld [vmem:[#allocation9 + $0x20] sm:$0xff]  ;;  %v1026_v31 = vld [vmem:[#allocation9 + $0x18] sm:$0xff]  ;;  %v1025_v33 = vld [vmem:[#allocation9 + $0x10] sm:$0xff] }
  0x26   :  { %155 = vmatpush.msra.mxu0 %v142_v5  ;;  %v1035_v30 = vld [vmem:[#allocation9 + $0x60] sm:$0xff]  ;;  %v1034_v32 = vld [vmem:[#allocation9 + $0x58] sm:$0xff]  ;;  %v1033_v34 = vld [vmem:[#allocation9 + $0x50] sm:$0xff] }
  0x27   :  { %v1081_v10 = vpop.eup %1080  ;;  %v1024_v35 = vld [vmem:[#allocation9 + $0x8] sm:$0xff]  ;;  %v1023_v37 = vld [vmem:[#allocation9] sm:$0xff]  ;;  %v425_v42 = vld [vmem:[#allocation12 + $0xf0] sm:$0xff] }
  0x28   :  { %156 = vmatpush.msra.mxu0 %v141_v7  ;;  %v126_v12 = vadd.f32 1.0, %v1081_v10  ;;  %363 = vmatpush.bf16.msra.mxu1 %v1029_v25  ;;  %v1032_v36 = vld [vmem:[#allocation9 + $0x48] sm:$0xff]  ;;  %v1031_v38 = vld [vmem:[#allocation9 + $0x40] sm:$0xff]  ;;  %v421_v51 = vld [vmem:[#allocation12 + $0xd0] sm:$0xff] }
  0x29   :  { %376 = vmatpush.bf16.msra.mxu2 %v1037_v26  ;;  %v1077_v39 = vld [vmem:[%s1397_s2] ss:$0 sm:$0xff]  ;;  %v426_v43 = vld [vmem:[#allocation12 + $0xf8] sm:$0xff]  ;;  %433 = vmatpush.msra.mxu3 %v425_v42  ;;  %v424_v45 = vld [vmem:[#allocation12 + $0xe8] sm:$0xff] }
  0x2a   :  { %157 = vmatpush.msra.mxu0 %v140_v8  ;;  %v127_v14 = vmul.f32 0.5, %v126_v12  ;;  %v423_v44 = vld [vmem:[#allocation12 + $0xe0] sm:$0xff]  ;;  %v422_v52 = vld [vmem:[#allocation12 + $0xd8] sm:$0xff]  ;;  %v420_v62 = vld [vmem:[#allocation12 + $0xc8] sm:$0xff] }
  0x2b   :  { %434 = vmatpush.msra.mxu3 %v423_v44  ;;  %v419_v61 = vld [vmem:[#allocation12 + $0xc0] sm:$0xff]  ;;  %v418_v5 = vld [vmem:[#allocation12 + $0xb8] sm:$0xff]  ;;  %v412_v24 = vld [vmem:[#allocation12 + $0x88] sm:$0xff] }
  0x2c   :  { %158 = vmatpush.msra.mxu0 %v139_v9  ;;  %v128_v16 = vmul.f32 %v127_v14, %v123_v4  ;;  %364 = vmatpush.bf16.msra.mxu1 %v1028_v27  ;;  %v416_v14 = vld [vmem:[#allocation12 + $0xa8] sm:$0xff]  ;;  %v411_v23 = vld [vmem:[#allocation12 + $0x80] sm:$0xff]  ;;  %v409_v27 = vld [vmem:[#allocation12 + $0x70] sm:$0xff] }
  0x2d   :  { %377 = vmatpush.bf16.msra.mxu2 %v1036_v28  ;;  %435 = vmatpush.msra.mxu3 %v421_v51  ;;  %v410_v28 = vld [vmem:[#allocation12 + $0x78] sm:$0xff]  ;;  %v401_v42 = vld [vmem:[#allocation12 + $0x30] sm:$0xff]  ;;  %v399_v44 = vld [vmem:[#allocation12 + $0x20] sm:$0xff] }
  0x2e   :  { %159 = vmatpush.msra.mxu0 %v138_v11  ;;  %v129_v18 = vpack.c.bf16 %v128_v16, %v128_v16 }
  0x2f   :  { %436 = vmatpush.msra.mxu3 %v419_v61 }
  0x30   :  { %160 = vmatpush.msra.mxu0 %v137_v13  ;;  %130 = vst [vmem:[#allocation2] sm:$0xf] %v129_v18  ;;  %365 = vmatpush.bf16.msra.mxu1 %v1027_v29  ;;  %v415_v13 = vld [vmem:[#allocation12 + $0xa0] sm:$0xff]  ;;  %v413_v18 = vld [vmem:[#allocation12 + $0x90] sm:$0xff] }
  0x31   :  { %378 = vmatpush.bf16.msra.mxu2 %v1035_v30  ;;  %v407_v30 = vld [vmem:[#allocation12 + $0x60] sm:$0xff] }
  0x32   :  { %161 = vmatpush.msra.mxu0 %v136_v15 }
  0x34   :  { %162 = vmatpush.msra.mxu0 %v135_v17  ;;  %366 = vmatpush.bf16.msra.mxu1 %v1026_v31  ;;  %v408_v31 = vld [vmem:[#allocation12 + $0x68] sm:$0xff] }
  0x35   :  { %379 = vmatpush.bf16.msra.mxu2 %v1034_v32 }
  0x36   :  { %163 = vmatpush.msra.mxu0 %v134_v19  ;;  %v414_v19 = vld [vmem:[#allocation12 + $0x98] sm:$0xff] }
  0x38   :  { %164 = vmatpush.msra.mxu0 %v133_v20  ;;  %367 = vmatpush.bf16.msra.mxu1 %v1025_v33  ;;  %v405_v33 = vld [vmem:[#allocation12 + $0x50] sm:$0xff] }
  0x39   :  { %380 = vmatpush.bf16.msra.mxu2 %v1033_v34  ;;  %v406_v34 = vld [vmem:[#allocation12 + $0x58] sm:$0xff] }
  0x3a   :  { %165 = vmatpush.msra.mxu0 %v132_v21 }
  0x3c   :  { %166 = vmatpush.msra.mxu0 %v131_v22  ;;  %368 = vmatpush.bf16.msra.mxu1 %v1024_v35 }
  0x3d   :  { %167 = vmatmul.f32.vlgmr.msra.gmra.mxu0 %v123_v4  ;;  %381 = vmatpush.bf16.msra.mxu2 %v1032_v36  ;;  %v417_v4 = vld [vmem:[#allocation12 + $0xb0] sm:$0xff] }
  0x3e   :  { %453 = vmatpush.msrb.mxu0 %v426_v43  ;;  %437 = vmatpush.msra.mxu3 %v417_v4  ;;  %v402_v43 = vld [vmem:[#allocation12 + $0x38] sm:$0xff]  ;;  %v1053_v4 = vld [vmem:[#allocation13 + $0x70] sm:$0xff] }
  0x40   :  { %369 = vmatpush.bf16.msra.mxu1 %v1023_v37  ;;  %454 = vmatpush.msrb.mxu0 %v424_v45  ;;  %v400_v45 = vld [vmem:[#allocation12 + $0x28] sm:$0xff] }
  0x41   :  { %382 = vmatpush.bf16.msra.mxu2 %v1031_v38  ;;  %438 = vmatpush.msra.mxu3 %v415_v13  ;;  %v1050_v13 = vld [vmem:[#allocation13 + $0x58] sm:$0xff] }
  0x42   :  { %455 = vmatpush.msrb.mxu0 %v422_v52  ;;  %v1078_v52 = vld [vmem:[#allocation10] ss:$0 sm:$0xff] }
  0x43   :  { %439 = vmatpush.msra.mxu3 %v413_v18  ;;  %v1057_v18 = vld [vmem:[#allocation13 + $0x90] sm:$0xff] }
  0x44   :  { %456 = vmatpush.msrb.mxu0 %v420_v62 }
  0x45   :  { %440 = vmatpush.msra.mxu3 %v411_v23 }
  0x46   :  { %457 = vmatpush.msrb.mxu0 %v418_v5  ;;  %v1061_v5 = vld [vmem:[#allocation13 + $0xb0] sm:$0xff] }
  0x47   :  { %441 = vmatpush.msra.mxu3 %v409_v27 }
  0x48   :  { %458 = vmatpush.msrb.mxu0 %v416_v14  ;;  %v1058_v14 = vld [vmem:[#allocation13 + $0x98] sm:$0xff] }
  0x49   :  { %442 = vmatpush.msra.mxu3 %v407_v30 }
  0x4a   :  { %459 = vmatpush.msrb.mxu0 %v414_v19 }
  0x4b   :  { %443 = vmatpush.msra.mxu3 %v405_v33 }
  0x4c   :  { %460 = vmatpush.msrb.mxu0 %v412_v24 }
  0x4e   :  { %461 = vmatpush.msrb.mxu0 %v410_v28  ;;  %v1055_v28 = vld [vmem:[#allocation13 + $0x80] sm:$0xff] }
  0x50   :  { %462 = vmatpush.msrb.mxu0 %v408_v31 }
  0x52   :  { %463 = vmatpush.msrb.mxu0 %v406_v34 }
  0xba   :  { %v168_v40 = vpop.f32.mrf.mxu0 }
  0xbb   :  { %v169_v41 = vadd.f32 %v1077_v39, %v168_v40  ;;  %v403_v40 = vld [vmem:[#allocation12 + $0x40] sm:$0xff] }
  0xbc   :  { %444 = vmatpush.msra.mxu3 %v403_v40 }
  0xbd   :  { %vm171_vm0 = vcmp.ge.f32.partialorder %v169_v41, 0.0  ;;  %vm172_vm1 = vcmp.lt.f32.partialorder %v169_v41, 1.0  ;;  %vm176_vm2 = vcmp.ge.f32.partialorder %v169_v41, 1.0  ;;  %vm177_vm3 = vcmp.lt.f32.partialorder %v169_v41, 2.0 }
  0xbe   :  { %vm173_vm4 = vmand %vm171_vm0, %vm172_vm1  ;;  %vm181_vm5 = vcmp.ge.f32.partialorder %v169_v41, 2.0  ;;  %vm182_vm6 = vcmp.lt.f32.partialorder %v169_v41, 3.0  ;;  %vm186_vm7 = vcmp.ge.f32.partialorder %v169_v41, 3.0  ;;  %vm187_vm8 = vcmp.lt.f32.partialorder %v169_v41, 4.0  ;;  %445 = vmatpush.msra.mxu3 %v401_v42 }
  0xbf   :  { %v842_v47 = vsel %vm173_vm4, 1.0, %v1274_v46  ;;  %vm178_vm9 = vmand %vm176_vm2, %vm177_vm3  ;;  %v192_v48 = vsub.f32 2.0, %v169_v41  ;;  %v846_v49 = vadd.f32 -1.0, %v169_v41  ;;  %v197_v50 = vsub.f32 3.0, %v169_v41 }
  0xc0   :  { %v843_v53 = vsel %vm178_vm9, 1.0, %v1274_v46  ;;  %vm183_vm10 = vmand %vm181_vm5, %vm182_vm6  ;;  %v191_v54 = vmul.f32 %v842_v47, %v169_v41  ;;  %v847_v55 = vadd.f32 -2.0, %v169_v41  ;;  %v202_v56 = vsub.f32 4.0, %v169_v41  ;;  %446 = vmatpush.msra.mxu3 %v399_v44  ;;  %v397_v47 = vld [vmem:[#allocation12 + $0x10] sm:$0xff] }
  0xc1   :  { %v844_v57 = vsel %vm183_vm10, 1.0, %v1274_v46  ;;  %vm188_vm11 = vmand %vm186_vm7, %vm187_vm8  ;;  %v193_v58 = vmul.f32 %v843_v53, %v192_v48  ;;  %v196_v59 = vmul.f32 %v846_v49, %v843_v53  ;;  %v205_v60 = vmul.f32 0.5, %v169_v41  ;;  %v398_v48 = vld [vmem:[#allocation12 + $0x18] sm:$0xff]  ;;  %v395_v49 = vld [vmem:[#allocation12] sm:$0xff] }
  0xc2   :  { %v845_v63 = vsel %vm188_vm11, 1.0, %v1274_v46  ;;  %v198_v0 = vmul.f32 %v844_v57, %v197_v50  ;;  %v201_v1 = vmul.f32 %v847_v55, %v844_v57  ;;  %v215_v12 = vmul.f32 0.33333334, %v169_v41  ;;  %v404_v41 = vld [vmem:[#allocation12 + $0x48] sm:$0xff]  ;;  %447 = vmatpush.msra.mxu3 %v397_v47 }
  0xc3   :  { %v194_v2 = vadd.f32 %v193_v58, %v191_v54  ;;  %v203_v3 = vmul.f32 %v845_v63, %v202_v56  ;;  %v207_v7 = vsub.f32 1.5, %v205_v60  ;;  %v848_v8 = vadd.f32 -0.5, %v205_v60  ;;  %464 = vmatpush.msrb.mxu0 %v404_v41  ;;  %v396_v50 = vld [vmem:[#allocation12 + $0x8] sm:$0xff] }
  0xc4   :  { %v199_v6 = vadd.f32 %v198_v0, %v196_v59  ;;  %v212_v11 = vsub.f32 2.0, %v205_v60  ;;  %v217_v22 = vsub.f32 1.3333334, %v215_v12  ;;  %448 = vmatpush.msra.mxu3 %v395_v49  ;;  %v1046_v0 = vld [vmem:[#allocation13 + $0x38] sm:$0xff] }
  0xc5   :  { %v204_v9 = vadd.f32 %v203_v3, %v201_v1  ;;  %v206_v10 = vmul.f32 %v205_v60, %v194_v2  ;;  %465 = vmatpush.msrb.mxu0 %v402_v43  ;;  %v1054_v1 = vld [vmem:[#allocation13 + $0x78] sm:$0xff]  ;;  %782 = vmatpush.bf16.msrb.mxu1 %v1046_v0  ;;  %v1045_v3 = vld [vmem:[#allocation13 + $0x30] sm:$0xff] }
  0xc6   :  { %v208_v15 = vmul.f32 %v207_v7, %v199_v6  ;;  %v211_v16 = vmul.f32 %v848_v8, %v199_v6  ;;  %v1062_v2 = vld [vmem:[#allocation13 + $0xb8] sm:$0xff]  ;;  %795 = vmatpush.bf16.msrb.mxu2 %v1054_v1  ;;  %v1044_v6 = vld [vmem:[#allocation13 + $0x28] sm:$0xff] }
  0xc7   :  { %v213_v17 = vmul.f32 %v212_v11, %v204_v9  ;;  %466 = vmatpush.msrb.mxu0 %v400_v45  ;;  %808 = vmatpush.bf16.msrb.mxu3 %v1062_v2  ;;  %v1052_v7 = vld [vmem:[#allocation13 + $0x68] sm:$0xff]  ;;  %v1043_v9 = vld [vmem:[#allocation13 + $0x20] sm:$0xff] }
  0xc8   :  { %v209_v20 = vadd.f32 %v208_v15, %v206_v10  ;;  %v1060_v8 = vld [vmem:[#allocation13 + $0xa8] sm:$0xff]  ;;  %v1051_v10 = vld [vmem:[#allocation13 + $0x60] sm:$0xff]  ;;  %v1041_v15 = vld [vmem:[#allocation13 + $0x10] sm:$0xff] }
  0xc9   :  { %v214_v21 = vadd.f32 %v213_v17, %v211_v16  ;;  %467 = vmatpush.msrb.mxu0 %v398_v48  ;;  %783 = vmatpush.bf16.msrb.mxu1 %v1045_v3  ;;  %v1059_v11 = vld [vmem:[#allocation13 + $0xa0] sm:$0xff]  ;;  %v1049_v16 = vld [vmem:[#allocation13 + $0x50] sm:$0xff] }
  0xca   :  { %v216_v25 = vmul.f32 %v215_v12, %v209_v20  ;;  %796 = vmatpush.bf16.msrb.mxu2 %v1053_v4  ;;  %v1042_v12 = vld [vmem:[#allocation13 + $0x18] sm:$0xff]  ;;  %v427_v17 = vld [vmem:[%s1401_s6] sm:$0x3]  ;;  %v1040_v20 = vld [vmem:[#allocation13 + $0x8] sm:$0xff] }
  0xcb   :  { %v218_v26 = vmul.f32 %v217_v22, %v214_v21  ;;  %468 = vmatpush.msrb.mxu0 %v396_v50  ;;  %809 = vmatpush.bf16.msrb.mxu3 %v1061_v5  ;;  %v430_v19 = vperm.slane %v427_v17, 1  ;;  %v1048_v21 = vld [vmem:[#allocation13 + $0x48] sm:$0xff]  ;;  %v429_v27 = vperm.slane %v427_v17, 0 }
  0xcc   :  { %v1056_v22 = vld [vmem:[#allocation13 + $0x88] sm:$0xff] }
  0xcd   :  { %v219_v29 = vadd.f32 %v218_v26, %v216_v25  ;;  %784 = vmatpush.bf16.msrb.mxu1 %v1044_v6  ;;  %v1039_v25 = vld [vmem:[#allocation13] sm:$0xff] }
  0xce   :  { %797 = vmatpush.bf16.msrb.mxu2 %v1052_v7  ;;  %v1047_v26 = vld [vmem:[#allocation13 + $0x40] sm:$0xff] }
  0xcf   :  { %v220_v32 = vpack.c.bf16 %v219_v29, %v219_v29  ;;  %810 = vmatpush.bf16.msrb.mxu3 %v1060_v8 }
  0xd1   :  { %221 = vst [vmem:[#allocation2 + $0x4] sm:$0xf] %v220_v32  ;;  %785 = vmatpush.bf16.msrb.mxu1 %v1043_v9 }
  0xd2   :  { %798 = vmatpush.bf16.msrb.mxu2 %v1051_v10 }
  0xd3   :  { %811 = vmatpush.bf16.msrb.mxu3 %v1059_v11 }
  0xd5   :  { %786 = vmatpush.bf16.msrb.mxu1 %v1042_v12 }
  0xd6   :  { %799 = vmatpush.bf16.msrb.mxu2 %v1050_v13 }
  0xd7   :  { %812 = vmatpush.bf16.msrb.mxu3 %v1058_v14 }
  0xd8   :  { %v222_v35 = vld [vmem:[#allocation2] sm:$0xff] }
  0xd9   :  { %v260_v36 = vunpack.c.l.b16 %v222_v35  ;;  %v261_v37 = vunpack.c.h.b16 %v222_v35  ;;  %787 = vmatpush.bf16.msrb.mxu1 %v1041_v15 }
  0xda   :  { %800 = vmatpush.bf16.msrb.mxu2 %v1049_v16 }
  0xdb   :  { %v262_v38 = vpack.c.b16 %v260_v36, %v260_v36  ;;  %v263_v39 = vpack.c.b16 %v261_v37, %v261_v37  ;;  %813 = vmatpush.bf16.msrb.mxu3 %v1057_v18 }
  0xdd   :  { %370 = vmatmul.bf16.vlgmr.msra.gmra.mxu1 %v262_v38  ;;  %383 = vmatmul.bf16.vlgmr.msra.gmra.mxu2 %v263_v39 }
  0xde   :  { %788 = vmatpush.bf16.msrb.mxu1 %v1040_v20  ;;  %801 = vmatpush.bf16.msrb.mxu2 %v1048_v21 }
  0xdf   :  { %814 = vmatpush.bf16.msrb.mxu3 %v1056_v22 }
  0xe2   :  { %789 = vmatpush.bf16.msrb.mxu1 %v1039_v25  ;;  %802 = vmatpush.bf16.msrb.mxu2 %v1047_v26 }
  0xe3   :  { %815 = vmatpush.bf16.msrb.mxu3 %v1055_v28 }
 0x15a   :  { %v371_v51 = vpop.f32.mrf.mxu1 }
 0x15b   :  { %v372_v53 = vadd.f32 %v1078_v52, %v371_v51 }
 0x160   :  { %v384_v54 = vpop.f32.mrf.mxu2 }
 0x161   :  { %v385_v55 = vadd.f32 %v384_v54, %v372_v53 }
 0x162   :  { %v373_v56 = vpop.f32.mrf.mxu1 }
 0x163   :  { %v388_v57 = vmul.f32 0.5, %v385_v55  ;;  %449 = vmatmul.f32.vlgmr.msra.gmra.mxu3 %v385_v55  ;;  %469 = vmatmul.f32.vlgmr.msrb.gmra.mxu0 %v385_v55 }
 0x165   :  { %1082 = vtanh.f32 %v388_v57 }
 0x168   :  { %v386_v58 = vpop.f32.mrf.mxu2 }
 0x16b   :  { %v1083_v59 = vpop.eup %1082 }
 0x16c   :  { %v390_v60 = vadd.f32 1.0, %v1083_v59 }
 0x16e   :  { %v391_v61 = vmul.f32 0.5, %v390_v60 }
 0x170   :  { %v392_v62 = vmul.f32 %v391_v61, %v385_v55 }
 0x172   :  { %v393_v63 = vpack.c.bf16 %v392_v62, %v392_v62 }
 0x174   :  { %394 = vst [vmem:[#allocation3] sm:$0xf] %v393_v63 }
 0x1e0   :  { %v470_v23 = vpop.f32.mrf.mxu0 }
 0x1e1   :  { %v1359_v24 = vadd.f32 %v470_v23, %v430_v19 }
 0x1e3   :  { %vm474_vm12 = vcmp.ge.f32.partialorder %v1359_v24, 0.0  ;;  %vm476_vm13 = vcmp.lt.f32.partialorder %v1359_v24, 1.0  ;;  %vm484_vm14 = vcmp.ge.f32.partialorder %v1359_v24, 1.0  ;;  %vm486_vm15 = vcmp.lt.f32.partialorder %v1359_v24, 2.0 }
 0x1e4   :  { %vm478_vm0 = vmand %vm474_vm12, %vm476_vm13  ;;  %vm494_vm1 = vcmp.ge.f32.partialorder %v1359_v24, 2.0  ;;  %vm496_vm2 = vcmp.lt.f32.partialorder %v1359_v24, 3.0  ;;  %vm504_vm3 = vcmp.ge.f32.partialorder %v1359_v24, 3.0  ;;  %vm506_vm4 = vcmp.lt.f32.partialorder %v1359_v24, 4.0 }
 0x1e5   :  { %v914_v29 = vsel %vm478_vm0, 1.0, %v1274_v46  ;;  %vm488_vm5 = vmand %vm484_vm14, %vm486_vm15  ;;  %v516_v30 = vsub.f32 2.0, %v1359_v24  ;;  %v922_v31 = vadd.f32 -1.0, %v1359_v24  ;;  %v526_v32 = vsub.f32 3.0, %v1359_v24 }
 0x1e6   :  { %v450_v33 = vpop.f32.mrf.mxu3  ;;  %v916_v34 = vsel %vm488_vm5, 1.0, %v1274_v46  ;;  %vm498_vm6 = vmand %vm494_vm1, %vm496_vm2  ;;  %v514_v35 = vmul.f32 %v914_v29, %v1359_v24  ;;  %v924_v36 = vadd.f32 -2.0, %v1359_v24  ;;  %v536_v37 = vsub.f32 4.0, %v1359_v24 }
 0x1e7   :  { %v451_v38 = vadd.f32 %v450_v33, %v429_v27  ;;  %v918_v39 = vsel %vm498_vm6, 1.0, %v1274_v46  ;;  %vm508_vm7 = vmand %vm504_vm3, %vm506_vm4  ;;  %v518_v40 = vmul.f32 %v916_v34, %v516_v30  ;;  %v524_v41 = vmul.f32 %v922_v31, %v916_v34 }
 0x1e8   :  { %v920_v42 = vsel %vm508_vm7, 1.0, %v1274_v46  ;;  %v528_v43 = vmul.f32 %v918_v39, %v526_v32  ;;  %v534_v44 = vmul.f32 %v924_v36, %v918_v39  ;;  %v542_v45 = vmul.f32 0.5, %v1359_v24 }
 0x1e9   :  { %vm473_vm8 = vcmp.ge.f32.partialorder %v451_v38, 0.0  ;;  %vm475_vm9 = vcmp.lt.f32.partialorder %v451_v38, 1.0  ;;  %vm483_vm10 = vcmp.ge.f32.partialorder %v451_v38, 1.0  ;;  %vm485_vm11 = vcmp.lt.f32.partialorder %v451_v38, 2.0 }
 0x1ea   :  { %vm477_vm12 = vmand %vm473_vm8, %vm475_vm9  ;;  %vm493_vm13 = vcmp.ge.f32.partialorder %v451_v38, 2.0  ;;  %vm495_vm14 = vcmp.lt.f32.partialorder %v451_v38, 3.0  ;;  %vm503_vm15 = vcmp.ge.f32.partialorder %v451_v38, 3.0  ;;  %vm505_vm0 = vcmp.lt.f32.partialorder %v451_v38, 4.0 }
 0x1eb   :  { %v913_v47 = vsel %vm477_vm12, 1.0, %v1274_v46  ;;  %vm487_vm1 = vmand %vm483_vm10, %vm485_vm11  ;;  %v515_v48 = vsub.f32 2.0, %v451_v38  ;;  %v520_v49 = vadd.f32 %v518_v40, %v514_v35  ;;  %v921_v50 = vadd.f32 -1.0, %v451_v38 }
 0x1ec   :  { %v915_v51 = vsel %vm487_vm1, 1.0, %v1274_v46  ;;  %vm497_vm2 = vmand %vm493_vm13, %vm495_vm14  ;;  %v513_v52 = vmul.f32 %v913_v47, %v451_v38  ;;  %v525_v53 = vsub.f32 3.0, %v451_v38  ;;  %v530_v54 = vadd.f32 %v528_v43, %v524_v41  ;;  %v1079_v43 = vld [vmem:[%s1403_s8] ss:$0 sm:$0xff] }
 0x1ed   :  { %v917_v55 = vsel %vm497_vm2, 1.0, %v1274_v46  ;;  %vm507_vm3 = vmand %vm503_vm15, %vm505_vm0  ;;  %v517_v56 = vmul.f32 %v915_v51, %v515_v48  ;;  %v523_v57 = vmul.f32 %v921_v50, %v915_v51  ;;  %v923_v58 = vadd.f32 -2.0, %v451_v38 }
 0x1ee   :  { %v919_v59 = vsel %vm507_vm3, 1.0, %v1274_v46  ;;  %v527_v60 = vmul.f32 %v917_v55, %v525_v53  ;;  %v535_v61 = vsub.f32 4.0, %v451_v38  ;;  %v538_v62 = vmul.f32 %v920_v42, %v536_v37 }
 0x1ef   :  { %v519_v63 = vadd.f32 %v517_v56, %v513_v52  ;;  %v533_v0 = vmul.f32 %v923_v58, %v917_v55  ;;  %v541_v1 = vmul.f32 0.5, %v451_v38  ;;  %v544_v2 = vmul.f32 %v542_v45, %v520_v49 }
 0x1f0   :  { %v529_v3 = vadd.f32 %v527_v60, %v523_v57  ;;  %v537_v4 = vmul.f32 %v919_v59, %v535_v61  ;;  %v540_v5 = vadd.f32 %v538_v62, %v534_v44  ;;  %v546_v6 = vsub.f32 1.5, %v542_v45 }
 0x1f1   :  { %v543_v7 = vmul.f32 %v541_v1, %v519_v63  ;;  %v545_v8 = vsub.f32 1.5, %v541_v1  ;;  %v925_v9 = vadd.f32 -0.5, %v541_v1  ;;  %v926_v10 = vadd.f32 -0.5, %v542_v45 }
 0x1f2   :  { %v539_v11 = vadd.f32 %v537_v4, %v533_v0  ;;  %v548_v12 = vmul.f32 %v546_v6, %v530_v54  ;;  %v555_v13 = vsub.f32 2.0, %v541_v1  ;;  %v556_v14 = vsub.f32 2.0, %v542_v45 }
 0x1f3   :  { %v547_v46 = vmul.f32 %v545_v8, %v529_v3  ;;  %v553_v15 = vmul.f32 %v925_v9, %v529_v3  ;;  %v554_v16 = vmul.f32 %v926_v10, %v530_v54  ;;  %v561_v17 = vmul.f32 0.33333334, %v451_v38 }
 0x1f4   :  { %v550_v18 = vadd.f32 %v548_v12, %v544_v2  ;;  %v557_v19 = vmul.f32 %v555_v13, %v539_v11  ;;  %v558_v20 = vmul.f32 %v556_v14, %v540_v5  ;;  %v562_v21 = vmul.f32 0.33333334, %v1359_v24 }
 0x1f5   :  { %v549_v22 = vadd.f32 %v547_v46, %v543_v7  ;;  %v565_v23 = vsub.f32 1.3333334, %v561_v17 }
 0x1f6   :  { %v559_v25 = vadd.f32 %v557_v19, %v553_v15  ;;  %v560_v26 = vadd.f32 %v558_v20, %v554_v16  ;;  %v564_v27 = vmul.f32 %v562_v21, %v550_v18  ;;  %v566_v28 = vsub.f32 1.3333334, %v562_v21 }
 0x1f7   :  { %v563_v29 = vmul.f32 %v561_v17, %v549_v22 }
 0x1f8   :  { %v567_v30 = vmul.f32 %v565_v23, %v559_v25  ;;  %v568_v31 = vmul.f32 %v566_v28, %v560_v26 }
 0x1fa   :  { %v569_v32 = vadd.f32 %v567_v30, %v563_v29  ;;  %v570_v33 = vadd.f32 %v568_v31, %v564_v27 }
 0x1fc   :  { %v571_v34 = vpack.c.bf16 %v570_v33, %v569_v32 }
 0x1fe   :  { %572 = vst [vmem:[#allocation3 + $0x4] sm:$0xff] %v571_v34 }
 0x205   :  { %v573_v35 = vld [vmem:[#allocation3] sm:$0xff]  ;;  %v574_v36 = vld [vmem:[#allocation3 + $0x8] sm:$0xf] }
 0x206   :  { %v629_v37 = vunpack.c.l.b16 %v573_v35  ;;  %v630_v38 = vunpack.c.h.b16 %v573_v35  ;;  %v631_v39 = vunpack.c.l.b16 %v574_v36 }
 0x208   :  { %v632_v40 = vpack.c.b16 %v629_v37, %v629_v37  ;;  %v633_v24 = vpack.c.b16 %v630_v38, %v630_v38  ;;  %v634_v41 = vpack.c.b16 %v631_v39, %v631_v39 }
 0x20a   :  { %790 = vmatmul.bf16.vlgmr.msrb.gmra.mxu1 %v632_v40  ;;  %803 = vmatmul.bf16.vlgmr.msrb.gmra.mxu2 %v633_v24 }
 0x20b   :  { %816 = vmatmul.bf16.vlgmr.msrb.gmra.mxu3 %v634_v41 }
 0x287   :  { %v791_v42 = vpop.f32.mrf.mxu1 }
 0x288   :  { %v792_v44 = vadd.f32 %v1079_v43, %v791_v42 }
 0x28d   :  { %v804_v45 = vpop.f32.mrf.mxu2 }
 0x28e   :  { %v805_v47 = vadd.f32 %v804_v45, %v792_v44  ;;  %v817_v48 = vpop.f32.mrf.mxu3 }
 0x28f   :  { %v793_v49 = vpop.f32.mrf.mxu1 }
 0x290   :  { %v818_v50 = vadd.f32 %v817_v48, %v805_v47 }
 0x292   :  { %821 = vst [vmem:[#allocation15] sm:$0xff] %v818_v50 }
 0x293   :  { %832 = dma.vmem_to_hbm [thread:$0]  %s828_s23, 128, %s830_s25, [#allocation6]  }
 0x295   :  { %v806_v51 = vpop.f32.mrf.mxu2 }
 0x296   :  { %v819_v52 = vpop.f32.mrf.mxu3 }
 0x297   :  { %1260 = dma.done.wait [#allocation6], 128  }
 0x298   :  { %1261 = vsyncadd [#allocation6], 4294967168 }
 0x299   :  { %837 = vsyncpa [#allocation5], 1 }
 0x29a   :  { %838 = vsyncpa [#allocation8], 1 }
 0x29b   :  { %839 = vsyncpa [#allocation11], 1 }
 0x29c   :  { %840 = vsyncpa [#allocation14], 1 }
 0x29d   :  { %841 = vsyncpa [#allocation6], 1 }

</bundles_post_ra>
